<compile_context>
chip_gen: v6e
topology: v6e:2x2x1
jax: 0.10.0
libtpu: 0.0.40
codegen_flags: <defaults>
</compile_context>

<pallas_src>
import jax
import jax.numpy as jnp
from jax.experimental import pallas as pl
from jax.experimental.pallas import tpu as pltpu


def _round_up(x, m):
    return ((x + m - 1) // m) * m


def packed_linear_kernel(x_ref, w_ref, b_ref, o_ref):
    # (tp, 128) @ (128, 128) on the MXU; lane-dense input and output.
    y = jnp.dot(x_ref[...], w_ref[...], preferred_element_type=jnp.float32)
    o_ref[...] = (y + b_ref[...]).astype(o_ref.dtype)


def linear_forward(x, weight, bias, *, packed_tile=4096, min_pallas_rows=4096):
    """torch.nn.Linear semantics: y = x @ weight.T + bias.

    x: (B, in_f) f32, weight: (out_f, in_f) f32, bias: (out_f,) f32.
    """
    B, in_f = x.shape
    out_f = weight.shape[0]

    # Tiny batches (or feature widths that don't pack into 128 lanes): let XLA
    # fuse the 4x4 linear into surrounding compute instead of paying kernel
    # launch + HBM round-trip for a handful of FLOPs.
    if B < min_pallas_rows or 128 % in_f != 0:
        return x @ weight.T + bias

    # ------------------ lane-dense packing (wrapper side) -------------------
    PACK = 128 // in_f                   # 32 logical rows per packed row
    in_w = PACK * in_f                   # 128
    out_w = PACK * out_f                 # 128 for Linear(4, 4)

    Bp = pl.cdiv(B, PACK)                # packed rows needed

    # Tile selection: MiB-class blocks, split as evenly as possible, at least
    # 2 grid steps so both v7x TensorCores receive blocks; tp multiple of 8.
    n_blocks = max(2, pl.cdiv(Bp, packed_tile))
    tp = _round_up(pl.cdiv(Bp, n_blocks), 8)
    Bp_pad = n_blocks * tp               # packed rows after padding

    # Pad B up to a whole number of tiles (keeps the pipeline; bounded VMEM).
    pad_rows = Bp_pad * PACK - B
    x_pad = jnp.pad(x, ((0, pad_rows), (0, 0))) if pad_rows else x
    x_packed = x_pad.reshape(Bp_pad, in_w)

    # Block-diagonal weight (PACK copies of W^T on the diagonal) + tiled bias.
    # Built once in the wrapper; only 64 KiB, resident in VMEM for the kernel.
    w_bd = jnp.kron(jnp.eye(PACK, dtype=weight.dtype), weight.T)   # (in_w, out_w)
    b_tiled = jnp.tile(bias, PACK).reshape(1, out_w)

    # Memory-dominated cost hint for XLA's scheduler.
    cost = pl.CostEstimate(
        flops=2 * Bp_pad * PACK * in_f * out_f,
        transcendentals=0,
        bytes_accessed=(x_packed.size + Bp_pad * out_w + w_bd.size + out_w) * 4,
    )

    y_packed = pl.pallas_call(
        packed_linear_kernel,
        out_shape=jax.ShapeDtypeStruct((Bp_pad, out_w), jnp.float32),
        grid=(n_blocks,),
        in_specs=[
            pl.BlockSpec((tp, in_w), lambda i: (i, 0)),      # x: batch-tiled, lane-dense
            pl.BlockSpec((in_w, out_w), lambda i: (0, 0)),   # block-diag weight: resident
            pl.BlockSpec((1, out_w), lambda i: (0, 0)),      # tiled bias: resident
        ],
        out_specs=pl.BlockSpec((tp, out_w), lambda i: (i, 0)),
        compiler_params=pltpu.CompilerParams(
            dimension_semantics=("parallel",),               # shard grid over 2 TCs (v7x)
        ),
        cost_estimate=cost,
    )(x_packed, w_bd, b_tiled)

    # Unpack lanes back to (rows, out_f) and drop the padded rows.
    return y_packed.reshape(Bp_pad * PACK, out_f)[:B]


if __name__ == "__main__":
    key = jax.random.PRNGKey(0)
    kx, kw, kb, kx2, kx3 = jax.random.split(key, 5)

    IN_F, OUT_F = 4, 4
    # Deterministic synthetic parameters (same shapes as torch.nn.Linear(4, 4)).
    weight = jax.random.normal(kw, (OUT_F, IN_F), dtype=jnp.float32) * 0.5  # (out, in)
    bias = jax.random.normal(kb, (OUT_F,), dtype=jnp.float32) * 0.1

    # 1) Spec-sized input (B=2): fused plain-XLA path (no standalone kernel).
    x = jax.random.normal(kx, (2, IN_F), dtype=jnp.float32)
    y = linear_forward(x, weight, bias)
    jax.block_until_ready(y)
    assert y.shape == (2, OUT_F)
    assert jnp.allclose(y, x @ weight.T + bias, atol=1e-5, rtol=1e-5)

    # 2) Batched path, B a multiple of the pack factor: lane-dense Pallas
    #    kernel with a 2-step grid (one block per v7x TensorCore).
    B2 = 8192
    x2 = jax.random.normal(kx2, (B2, IN_F), dtype=jnp.float32)
    y2 = linear_forward(x2, weight, bias)
    jax.block_until_ready(y2)
    assert y2.shape == (B2, OUT_F)
    assert jnp.allclose(y2, x2 @ weight.T + bias, atol=1e-5, rtol=1e-5)

    # 3) Ragged batch: exercises wrapper-side padding + multi-step grid
    #    (MiB-class blocks, no single-block collapse).
    B3 = 262221
    x3 = jax.random.normal(kx3, (B3, IN_F), dtype=jnp.float32)
    y3 = linear_forward(x3, weight, bias)
    jax.block_until_ready(y3)
    assert y3.shape == (B3, OUT_F)
    assert jnp.allclose(y3, x3 @ weight.T + bias, atol=1e-5, rtol=1e-5)

    print("KERNEL_OK")
</pallas_src>

<mosaic_0001>
module attributes {stable_mosaic.version = 11 : i64} {
  func.func @packed_linear_kernel(%arg0: i32, %arg1: memref<128x128xf32, #tpu.memory_space<vmem>>, %arg2: memref<128x128xf32, #tpu.memory_space<vmem>>, %arg3: memref<1x128xf32, #tpu.memory_space<vmem>>, %arg4: memref<128x128xf32, #tpu.memory_space<vmem>>) attributes {dimension_semantics = [#tpu.dimension_semantics<parallel>], iteration_bounds = array<i64: 2>, scalar_prefetch = 0 : i64, scratch_operands = 0 : i64, tpu.core_type = #tpu.core_type<tc>, window_params = [{transform_indices = @transform_0, window_bounds = array<i64: 128, 128>}, {pipeline_mode = #tpu.pipeline_mode<synchronous>, transform_indices = @transform_1, window_bounds = array<i64: 128, 128>}, {pipeline_mode = #tpu.pipeline_mode<synchronous>, transform_indices = @transform_2, window_bounds = array<i64: 1, 128>}, {transform_indices = @transform_3, window_bounds = array<i64: 128, 128>}]} {
    %c0 = arith.constant 0 : index
    %c0_0 = arith.constant 0 : index
    %0 = vector.load %arg1[%c0, %c0_0] : memref<128x128xf32, #tpu.memory_space<vmem>>, vector<128x128xf32>
    %c0_1 = arith.constant 0 : index
    %c0_2 = arith.constant 0 : index
    %1 = vector.load %arg2[%c0_1, %c0_2] : memref<128x128xf32, #tpu.memory_space<vmem>>, vector<128x128xf32>
    %cst = arith.constant dense<0.000000e+00> : vector<128x128xf32>
    %2 = tpu.matmul %0, %1, %cst {dimension_numbers = #tpu.dot_dimension_numbers<[1], [0], [0], [1], [0, 0, 1, 1], [], []>} : vector<128x128xf32>, vector<128x128xf32>, vector<128x128xf32> -> vector<128x128xf32>
    %c0_3 = arith.constant 0 : index
    %c0_4 = arith.constant 0 : index
    %3 = vector.load %arg3[%c0_3, %c0_4] : memref<1x128xf32, #tpu.memory_space<vmem>>, vector<1x128xf32>
    %4 = vector.broadcast %3 : vector<1x128xf32> to vector<128x128xf32>
    %5 = arith.addf %2, %4 : vector<128x128xf32>
    %c0_5 = arith.constant 0 : index
    %c0_6 = arith.constant 0 : index
    %6 = vector.load %arg4[%c0_5, %c0_6] : memref<128x128xf32, #tpu.memory_space<vmem>>, vector<128x128xf32>
    tpu.vector_store %arg4[%c0_5, %c0_6], %5 {strides = array<i32>} : memref<128x128xf32, #tpu.memory_space<vmem>>, vector<128x128xf32>,
    return
  }
  func.func @transform_0(%arg0: i32) -> (i32, i32) {
    %c0_i32 = arith.constant 0 : i32
    %c0_i32_0 = arith.constant 0 : i32
    return %arg0, %c0_i32 : i32, i32
  }
  func.func @transform_1(%arg0: i32) -> (i32, i32) {
    %c0_i32 = arith.constant 0 : i32
    %c0_i32_0 = arith.constant 0 : i32
    %c0_i32_1 = arith.constant 0 : i32
    return %c0_i32, %c0_i32_0 : i32, i32
  }
  func.func @transform_2(%arg0: i32) -> (i32, i32) {
    %c0_i32 = arith.constant 0 : i32
    %c0_i32_0 = arith.constant 0 : i32
    %c0_i32_1 = arith.constant 0 : i32
    return %c0_i32, %c0_i32_0 : i32, i32
  }
  func.func @transform_3(%arg0: i32) -> (i32, i32) {
    %c0_i32 = arith.constant 0 : i32
    %c0_i32_0 = arith.constant 0 : i32
    return %arg0, %c0_i32 : i32, i32
  }
}

</mosaic_0001>

<bundles_post_ra>
// kernel: tpu_custom_call.1
= control target key start
LH: loop header
LB: loop body
LE: loop exit
PB: predicated region body
PF: predicated region fallthrough
CT: control target
= control target key end

     0   :  { %8 = vsyncpa [#allocation3], 0  ;;  %s1081_s0 = inlined_call_operand.hbm [shape: f32[256,128], index: 0, kind: input, shape index: {}]   ;;  %s1082_s1 = inlined_call_operand.hbm [shape: f32[128,128], index: 1, kind: input, shape index: {}]   ;;  %s1083_s2 = inlined_call_operand.vmem [shape: f32[1,128], index: 2, kind: input, shape index: {}]   ;;  %s1084_s3 = inlined_call_operand.hbm [shape: f32[256,128], index: 3, kind: output, shape index: {}]  }
   0x1   :  { %10 = vsyncpa [#allocation3 + $0x1], 0 }
   0x2   :  { %11 = vsyncpa [#allocation6], 0 }
   0x3   :  { %12 = vsyncpa [#allocation4], 0 }
   0x4   :  { %14 = vsyncpa [#allocation4 + $0x1], 0  ;;  %s854_s12 = smov 0   ;;  %s856_s13 = smov 0  }
   0x5   :  { %s858_s14 = smov 0   ;;  %s860_s15 = smov 0  }
   0x6 LB: > { %s875_s16 = sadd.s32 4294967295, %s825_s15   ;;  %s503_s17 = sadd.s32 4294967294, %s825_s15   ;;  %s825_s15 = sphi %s860_s15, %s1106_s15   ;;  %s821_s14 = sphi %s858_s14, %s1105_s14   ;;  %s817_s13 = sphi %s856_s13, %s1104_s13   ;;  %s813_s12 = sphi %s854_s12, %s1103_s12  }
   0x7   : > { %p40_p0 = scmp.ne.s32.totalorder %s817_s13, %s813_s12  ;;  %p1085_p1 = scmp.eq.s32.totalorder %s875_s16, 0 }
   0x8   : > { %p112_p3 = scmp.eq.s32.totalorder %s503_s17, 1  ;;  %p504_p5 = scmp.ge.s32.totalorder %s825_s15, 1 }
   0x9   : > { %p884_p4 = por %p1085_p1, %p40_p0  ;;  %p119_p7 = scmp.lt.s32.totalorder %s825_s15, 3 }
   0xa   : > { %p889_p6 = por %p112_p3, %p40_p0  ;;  %s827_s21 = smov [#allocation5]  }
   0xb   : > { %s1089_s18 = scalar_select %p884_p4, 1, 0 }
   0xc   : > { %s1090_s19 = scalar_select %p889_p6, 1, 0 }
   0xd   : > { %p894_p8 = pnand %p504_p5, %p119_p7  ;;  %s131_s22 = sshll.u32 %s827_s21, 4  ;;  %s132_s22 = int_to_ptr.vmem [resolvable:$true] %s131_s22 }
   0xe   : > { %s908_s24 = sadd.s32 1, %s825_s15   ;;  %s27_s25 = sadd.s32 1, %s821_s14 }
   0xf   : > { %s1091_s20 = scalar_select %p894_p8, 1, 0 }
  0x10   : > { %p650_p9 = pneg %p894_p8  ;;  %s24_s26 = ssub.s32 %s825_s15, %s908_s24 }
  0x11   : > { %s714_s27 = scalar_lea.vmem %s132_s22, 2048  ;;  %p722_p5 = scmp.lt.s32.totalorder %s132_s22, %s132_s22 }
  0x12   : > { %p903_p11 = pnand %p650_p9, %p1085_p1  ;;  %p715_p13 = scmp.ne.s32.totalorder %s132_s22, %s714_s27 }
  0x13   : > { %p723_p7 = scmp.lt.s32.totalorder %s714_s27, %s714_s27 }
  0x14   : > { %p705_p12 = pneg %p903_p11 }
  0x15   : > { %p724_p10 = por %p723_p7, %p722_p5 }
  0x16   : > { %p717_p0 = pnand %p715_p13, %p705_p12 }
  0x18   : > { %p718_p3 = pneg %p717_p0 }
  0x1a   : > { %p725_p2 = pnand %p724_p10, %p718_p3 }
  0x1c   : > { %728 = shalt.err (!%p725_p2)
}
  0x1d   : > { %s828_s28 = smov 128   ;;  %s829_s29 = smov 8  }
  0x1e   : > { %653 = dma.hbm_to_vmem [thread:$0]  (!%p903_p11), %s1082_s1, 2048, %s132_s22, [#allocation6], %s828_s28, %s828_s28, %s829_s29  }
  0x1f   : > { %p25_p2 = scmp.eq.s32.totalorder %s24_s26, 0  ;;  %p34_p9 = scmp.ne.s32.totalorder %s821_s14, %s817_s13 }
  0x20   : > { %p35_p10 = scmp.eq.s32.totalorder %s825_s15, 0  ;;  %p663_p12 = scmp.lt.s32.totalorder %s825_s15, 2 }
  0x21   : > { %s928_s5 = scalar_select %p25_p2, %s821_s14, %s27_s25  }
  0x22   : > { %p36_p13 = por %p35_p10, %p34_p9  ;;  %p1093_p0 = scmp.eq.s32.totalorder %s875_s16, 1 }
  0x23   : > { %s148_s7 = sand.u32 1, %s821_s14   ;;  %s520_s8 = sshll.u32 %s825_s15, 11 }
  0x24   : > { %p932_p3 = por %p1093_p0, %p34_p9  ;;  %s507_s9 = sshll.u32 %s148_s7, 7 }
  0x25   : > { %s941_s17 = scalar_lea.hbm %s1081_s0, %s520_s8  ;;  %s152_s21 = scalar_lea.vmem [#allocation2], %s507_s9 }
  0x26   : > { %s1094_s6 = scalar_select %p932_p3, 1, 0 }
  0x27   : > { %s159_s22 = sshll.u32 %s152_s21, 4  ;;  %p943_p11 = pnand %p663_p12, %p36_p13  ;;  %s947_s22 = int_to_ptr.vmem [resolvable:$true] %s159_s22 }
  0x28   : > { %s949_s25 = scalar_lea.sflag [#allocation3], %s148_s7  ;;  %s729_s26 = scalar_lea.hbm %s941_s17, 2048 }
  0x29   : > { %p730_p5 = scmp.ne.s32.totalorder %s941_s17, %s729_s26  ;;  %p731_p7 = pneg %p943_p11 }
  0x2a   : > { %s734_s4 = scalar_lea.hbm %s1081_s0, 4096  ;;  %p735_p10 = scmp.lt.s32.totalorder %s941_s17, %s1081_s0 }
  0x2b   : > { %p732_p2 = pnand %p731_p7, %p730_p5  ;;  %p736_p12 = scmp.lt.s32.totalorder %s734_s4, %s729_s26 }
  0x2d   : > { %p733_p9 = pneg %p732_p2  ;;  %p737_p13 = por %p736_p12, %p735_p10 }
  0x2f   : > { %p738_p0 = pnand %p737_p13, %p733_p9 }
  0x31   : > { %741 = shalt.err (!%p738_p0)
}
  0x32   : > { %s742_s7 = scalar_lea.vmem %s947_s22, 2048  ;;  %s830_s10 = smov [#allocation2]  }
  0x33   : > { %p743_p1 = scmp.ne.s32.totalorder %s947_s22, %s742_s7  ;;  %s747_s11 = sshll.u32 %s830_s10, 4  ;;  %s748_s11 = int_to_ptr.vmem [resolvable:$false] %s747_s11 }
  0x34   : > { %s749_s21 = scalar_lea.vmem %s748_s11, 4096  ;;  %p750_p2 = scmp.lt.s32.totalorder %s947_s22, %s748_s11 }
  0x35   : > { %p745_p6 = pnand %p743_p1, %p731_p7  ;;  %p751_p3 = scmp.lt.s32.totalorder %s749_s21, %s742_s7 }
  0x37   : > { %p746_p5 = pneg %p745_p6  ;;  %p752_p4 = por %p751_p3, %p750_p2 }
  0x39   : > { %p753_p8 = pnand %p752_p4, %p746_p5 }
  0x3b   : > { %756 = shalt.err (!%p753_p8)
}
  0x3c   : > { %657 = dma.hbm_to_vmem [thread:$0]  (!%p943_p11), %s941_s17, 2048, %s947_s22, %s949_s25, %s828_s28, %s828_s28, %s829_s29  }
  0x3d   : > { %p1096_p1 = scmp.ne.s32.totalorder %s1091_s20, 0 }
  0x3e   : > { %s976_s26 = sand.u32 (!%p1096_p1), 1, %s817_s13   ;;  %p1097_p4 = scmp.ne.s32.totalorder (!%p1096_p1), %s1089_s18, 0 }
  0x3f   : > { %171 = sbr.rel (%p1096_p1) target bundleno = 329 (0x149), region = 32  ;;  %s511_s27 = sshll.u32 (!%p1096_p1), %s976_s26, 7 }
  0x40   : > { %s174_s30 = scalar_lea.sflag (!%p1096_p1), [#allocation3], %s976_s26  ;;  %s982_s23 = scalar_lea.vmem (!%p1096_p1), [#allocation2], %s511_s27 }
  0x44   : > { %800 = dma.done.wait (%p1097_p4), %s174_s30, 2048  }
  0x45   : > { %802 = vsyncadd (%p1097_p4), %s174_s30, 4294965248  ;;  %p1098_p6 = scmp.eq.s32.totalorder %s875_s16, 0 }
  0x47   : > { %804 = dma.done.wait (%p1098_p6), [#allocation6], 2048   ;;  %p1099_p8 = pmov %p1098_p6 }
  0x48   : > { %v237_v0 = vld [vmem:[#allocation5 + $0x78] sm:$0xff]  ;;  %v236_v1 = vld [vmem:[#allocation5 + $0x70] sm:$0xff]  ;;  %v235_v2 = vld [vmem:[#allocation5 + $0x68] sm:$0xff]  ;;  %s1013_s28 = scalar_lea.vmem [#allocation7], %s511_s27  ;;  %s521_s29 = sshll.u32 %s875_s16, 11 }
  0x49   : > { %806 = vsyncadd (%p1099_p8), [#allocation6], 4294965248  ;;  %554 = vmatprep.subr.mxu0 %v237_v0  ;;  %610 = vmatprep.subr.mxu1 %v237_v0  ;;  %v234_v3 = vld [vmem:[#allocation5 + $0x60] sm:$0xff]  ;;  %v233_v4 = vld [vmem:[#allocation5 + $0x58] sm:$0xff]  ;;  %s420_s17 = sshll.u32 %s1013_s28, 4  ;;  %s1032_s4 = scalar_lea.hbm %s1084_s3, %s521_s29  ;;  %s1034_s17 = int_to_ptr.vmem [resolvable:$true] %s420_s17 }
  0x4a   : > { %555 = vmatpush3.msra.mxu0 %v237_v0  ;;  %626 = vmatpush3.msra.mxu1 %v237_v0  ;;  %v232_v5 = vld [vmem:[#allocation5 + $0x50] sm:$0xff]  ;;  %v231_v6 = vld [vmem:[#allocation5 + $0x48] sm:$0xff]  ;;  %v230_v7 = vld [vmem:[#allocation5 + $0x40] sm:$0xff]  ;;  %s407_s16 = scalar_lea.sflag [#allocation4], %s976_s26  ;;  %s757_s8 = scalar_lea.vmem %s1034_s17, 2048 }
  0x4b   : > { %556 = vmatprep.subr.mxu0 %v236_v1  ;;  %611 = vmatprep.subr.mxu1 %v236_v1  ;;  %v229_v8 = vld [vmem:[#allocation5 + $0x38] sm:$0xff]  ;;  %v228_v9 = vld [vmem:[#allocation5 + $0x30] sm:$0xff]  ;;  %v227_v10 = vld [vmem:[#allocation5 + $0x28] sm:$0xff]  ;;  %p758_p3 = scmp.ne.s32.totalorder %s1034_s17, %s757_s8  ;;  %p1100_p11 = scmp.ne.s32.totalorder %s1094_s6, 0 }
  0x4c   : > { %557 = vmatpush3.msra.mxu0 %v236_v1  ;;  %627 = vmatpush3.msra.mxu1 %v236_v1  ;;  %v226_v11 = vld [vmem:[#allocation5 + $0x20] sm:$0xff]  ;;  %v225_v12 = vld [vmem:[#allocation5 + $0x18] sm:$0xff]  ;;  %v224_v13 = vld [vmem:[#allocation5 + $0x10] sm:$0xff]  ;;  %s831_s9 = smov [#allocation7]  }
  0x4d   : > { %558 = vmatprep.subr.mxu0 %v235_v2  ;;  %612 = vmatprep.subr.mxu1 %v235_v2  ;;  %v223_v14 = vld [vmem:[#allocation5 + $0x8] sm:$0xff]  ;;  %v222_v15 = vld [vmem:[#allocation5] sm:$0xff]  ;;  %v208_v20 = vld [vmem:[%s982_s23 + $0x10] sm:$0xff]  ;;  %p759_p7 = pnand %p758_p3, %p1100_p11  ;;  %s761_s7 = sshll.u32 %s831_s9, 4  ;;  %s762_s7 = int_to_ptr.vmem [resolvable:$false] %s761_s7 }
  0x4e   : > { %559 = vmatpush3.msra.mxu0 %v235_v2  ;;  %628 = vmatpush3.msra.mxu1 %v235_v2  ;;  %v206_v16 = vld [vmem:[%s982_s23] sm:$0xff]  ;;  %v207_v18 = vld [vmem:[%s982_s23 + $0x8] sm:$0xff]  ;;  %v216_v21 = vld [vmem:[%s982_s23 + $0x50] sm:$0xff]  ;;  %s763_s10 = scalar_lea.vmem %s762_s7, 4096  ;;  %p764_p10 = scmp.lt.s32.totalorder %s1034_s17, %s762_s7 }
  0x4f   : > { %560 = vmatprep.subr.mxu0 %v234_v3  ;;  %613 = vmatprep.subr.mxu1 %v234_v3  ;;  %v214_v17 = vld [vmem:[%s982_s23 + $0x40] sm:$0xff]  ;;  %v215_v19 = vld [vmem:[%s982_s23 + $0x48] sm:$0xff]  ;;  %v209_v22 = vld [vmem:[%s982_s23 + $0x18] sm:$0xff]  ;;  %p760_p9 = pneg %p759_p7  ;;  %p765_p12 = scmp.lt.s32.totalorder %s763_s10, %s757_s8 }
  0x50   : > { %561 = vmatpush3.msra.mxu0 %v234_v3  ;;  %629 = vmatpush3.msra.mxu1 %v234_v3  ;;  %v217_v23 = vld [vmem:[%s982_s23 + $0x58] sm:$0xff]  ;;  %v210_v24 = vld [vmem:[%s982_s23 + $0x20] sm:$0xff]  ;;  %v211_v26 = vld [vmem:[%s982_s23 + $0x28] sm:$0xff] }
  0x51   : > { %562 = vmatprep.subr.mxu0 %v233_v4  ;;  %614 = vmatprep.subr.mxu1 %v233_v4  ;;  %v218_v25 = vld [vmem:[%s982_s23 + $0x60] sm:$0xff]  ;;  %v219_v27 = vld [vmem:[%s982_s23 + $0x68] sm:$0xff]  ;;  %v212_v28 = vld [vmem:[%s982_s23 + $0x30] sm:$0xff]  ;;  %p766_p13 = por %p765_p12, %p764_p10 }
  0x52   : > { %563 = vmatpush3.msra.mxu0 %v233_v4  ;;  %630 = vmatpush3.msra.mxu1 %v233_v4  ;;  %v220_v29 = vld [vmem:[%s982_s23 + $0x70] sm:$0xff]  ;;  %v213_v30 = vld [vmem:[%s982_s23 + $0x38] sm:$0xff]  ;;  %v514_v32 = vld [vmem:[%s1083_s2] ss:$0 sm:$0xff] }
  0x53   : > { %564 = vmatprep.subr.mxu0 %v232_v5  ;;  %615 = vmatprep.subr.mxu1 %v232_v5  ;;  %v221_v31 = vld [vmem:[%s982_s23 + $0x78] sm:$0xff]  ;;  %p767_p0 = pnand %p766_p13, %p760_p9 }
  0x54   : > { %565 = vmatpush3.msra.mxu0 %v232_v5  ;;  %631 = vmatpush3.msra.mxu1 %v232_v5 }
  0x55   : > { %566 = vmatprep.subr.mxu0 %v231_v6  ;;  %616 = vmatprep.subr.mxu1 %v231_v6 }
  0x56   : > { %567 = vmatpush3.msra.mxu0 %v231_v6  ;;  %632 = vmatpush3.msra.mxu1 %v231_v6 }
  0x57   : > { %568 = vmatprep.subr.mxu0 %v230_v7  ;;  %617 = vmatprep.subr.mxu1 %v230_v7 }
  0x58   : > { %569 = vmatpush3.msra.mxu0 %v230_v7  ;;  %633 = vmatpush3.msra.mxu1 %v230_v7 }
  0x59   : > { %570 = vmatprep.subr.mxu0 %v229_v8  ;;  %618 = vmatprep.subr.mxu1 %v229_v8 }
  0x5a   : > { %571 = vmatpush3.msra.mxu0 %v229_v8  ;;  %634 = vmatpush3.msra.mxu1 %v229_v8 }
  0x5b   : > { %572 = vmatprep.subr.mxu0 %v228_v9  ;;  %619 = vmatprep.subr.mxu1 %v228_v9 }
  0x5c   : > { %573 = vmatpush3.msra.mxu0 %v228_v9  ;;  %635 = vmatpush3.msra.mxu1 %v228_v9 }
  0x5d   : > { %574 = vmatprep.subr.mxu0 %v227_v10  ;;  %620 = vmatprep.subr.mxu1 %v227_v10 }
  0x5e   : > { %575 = vmatpush3.msra.mxu0 %v227_v10  ;;  %636 = vmatpush3.msra.mxu1 %v227_v10 }
  0x5f   : > { %576 = vmatprep.subr.mxu0 %v226_v11  ;;  %621 = vmatprep.subr.mxu1 %v226_v11 }
  0x60   : > { %577 = vmatpush3.msra.mxu0 %v226_v11  ;;  %637 = vmatpush3.msra.mxu1 %v226_v11 }
  0x61   : > { %578 = vmatprep.subr.mxu0 %v225_v12  ;;  %622 = vmatprep.subr.mxu1 %v225_v12 }
  0x62   : > { %579 = vmatpush3.msra.mxu0 %v225_v12  ;;  %638 = vmatpush3.msra.mxu1 %v225_v12 }
  0x63   : > { %580 = vmatprep.subr.mxu0 %v224_v13  ;;  %623 = vmatprep.subr.mxu1 %v224_v13 }
  0x64   : > { %581 = vmatpush3.msra.mxu0 %v224_v13  ;;  %639 = vmatpush3.msra.mxu1 %v224_v13 }
  0x65   : > { %582 = vmatprep.subr.mxu0 %v223_v14  ;;  %624 = vmatprep.subr.mxu1 %v223_v14 }
  0x66   : > { %583 = vmatpush3.msra.mxu0 %v223_v14  ;;  %640 = vmatpush3.msra.mxu1 %v223_v14 }
  0x67   : > { %584 = vmatprep.subr.mxu0 %v222_v15  ;;  %625 = vmatprep.subr.mxu1 %v222_v15 }
  0x68   : > { %585 = vmatpush3.msra.mxu0 %v222_v15  ;;  %641 = vmatpush3.msra.mxu1 %v222_v15 }
  0x69   : > { %586 = vmatprep.mubr.f32.mxu0 %v206_v16  ;;  %598 = vmatprep.mubr.f32.mxu1 %v214_v17 }
  0x6a   : > { %587 = vmatmul.mubr.f32.vlgmr.msra.gmra.mxu0 %v207_v18  ;;  %599 = vmatmul.mubr.f32.vlgmr.msra.gmra.mxu1 %v215_v19 }
  0x6b   : > { %589 = vmatprep.mubr.f32.mxu0 %v208_v20  ;;  %601 = vmatprep.mubr.f32.mxu1 %v216_v21 }
  0x6e   : > { %590 = vmatmul.mubr.f32.gmra.mxu0 %v209_v22  ;;  %602 = vmatmul.mubr.f32.gmra.mxu1 %v217_v23 }
  0x6f   : > { %592 = vmatprep.mubr.f32.mxu0 %v210_v24  ;;  %604 = vmatprep.mubr.f32.mxu1 %v218_v25 }
  0x72   : > { %593 = vmatmul.mubr.f32.gmra.mxu0 %v211_v26  ;;  %605 = vmatmul.mubr.f32.gmra.mxu1 %v219_v27 }
  0x73   : > { %595 = vmatprep.mubr.f32.mxu0 %v212_v28  ;;  %607 = vmatprep.mubr.f32.mxu1 %v220_v29 }
  0x76   : > { %596 = vmatmul.mubr.f32.gmra.mxu0 %v213_v30  ;;  %608 = vmatmul.mubr.f32.gmra.mxu1 %v221_v31 }
 0x12a   : > { %v588_v33 = vpop.f32.mrf.mxu0  ;;  %v600_v34 = vpop.f32.mrf.mxu1 }
 0x12b   : > { %v317_v35 = vadd.f32 %v588_v33, %v514_v32  ;;  %v357_v36 = vadd.f32 %v600_v34, %v514_v32 }
 0x12c   : > { %v311_v37 = vpop.f32.mrf.mxu0  ;;  %v351_v38 = vpop.f32.mrf.mxu1 }
 0x12d   : > { %391 = vst [vmem:[%s1013_s28 + $0x8] sm:$0xff] %v317_v35  ;;  %399 = vst [vmem:[%s1013_s28 + $0x48] sm:$0xff] %v357_v36  ;;  %v312_v39 = vadd.f32 %v514_v32, %v311_v37  ;;  %v352_v40 = vadd.f32 %v514_v32, %v351_v38 }
 0x12e   : > { %v591_v41 = vpop.f32.mrf.mxu0  ;;  %v603_v42 = vpop.f32.mrf.mxu1 }
 0x12f   : > { %390 = vst [vmem:[%s1013_s28] sm:$0xff] %v312_v39  ;;  %398 = vst [vmem:[%s1013_s28 + $0x40] sm:$0xff] %v352_v40  ;;  %v327_v43 = vadd.f32 %v591_v41, %v514_v32  ;;  %v367_v44 = vadd.f32 %v603_v42, %v514_v32 }
 0x130   : > { %v321_v45 = vpop.f32.mrf.mxu0  ;;  %v361_v46 = vpop.f32.mrf.mxu1 }
 0x131   : > { %393 = vst [vmem:[%s1013_s28 + $0x18] sm:$0xff] %v327_v43  ;;  %401 = vst [vmem:[%s1013_s28 + $0x58] sm:$0xff] %v367_v44  ;;  %v322_v47 = vadd.f32 %v514_v32, %v321_v45  ;;  %v362_v48 = vadd.f32 %v514_v32, %v361_v46 }
 0x132   : > { %v594_v49 = vpop.f32.mrf.mxu0  ;;  %v606_v50 = vpop.f32.mrf.mxu1 }
 0x133   : > { %392 = vst [vmem:[%s1013_s28 + $0x10] sm:$0xff] %v322_v47  ;;  %400 = vst [vmem:[%s1013_s28 + $0x50] sm:$0xff] %v362_v48  ;;  %v337_v51 = vadd.f32 %v594_v49, %v514_v32  ;;  %v377_v52 = vadd.f32 %v606_v50, %v514_v32 }
 0x134   : > { %v331_v53 = vpop.f32.mrf.mxu0  ;;  %v371_v54 = vpop.f32.mrf.mxu1 }
 0x135   : > { %395 = vst [vmem:[%s1013_s28 + $0x28] sm:$0xff] %v337_v51  ;;  %403 = vst [vmem:[%s1013_s28 + $0x68] sm:$0xff] %v377_v52  ;;  %v332_v55 = vadd.f32 %v514_v32, %v331_v53  ;;  %v372_v56 = vadd.f32 %v514_v32, %v371_v54 }
 0x136   : > { %v597_v57 = vpop.f32.mrf.mxu0  ;;  %v609_v58 = vpop.f32.mrf.mxu1 }
 0x137   : > { %394 = vst [vmem:[%s1013_s28 + $0x20] sm:$0xff] %v332_v55  ;;  %402 = vst [vmem:[%s1013_s28 + $0x60] sm:$0xff] %v372_v56  ;;  %v347_v59 = vadd.f32 %v597_v57, %v514_v32  ;;  %v387_v60 = vadd.f32 %v609_v58, %v514_v32 }
 0x138   : > { %v341_v61 = vpop.f32.mrf.mxu0  ;;  %v381_v62 = vpop.f32.mrf.mxu1 }
 0x139   : > { %397 = vst [vmem:[%s1013_s28 + $0x38] sm:$0xff] %v347_v59  ;;  %405 = vst [vmem:[%s1013_s28 + $0x78] sm:$0xff] %v387_v60  ;;  %v342_v63 = vadd.f32 %v514_v32, %v341_v61  ;;  %v382_v0 = vadd.f32 %v514_v32, %v381_v62 }
 0x13b   : > { %396 = vst [vmem:[%s1013_s28 + $0x30] sm:$0xff] %v342_v63  ;;  %404 = vst [vmem:[%s1013_s28 + $0x70] sm:$0xff] %v382_v0 }
 0x13c   : > { %770 = shalt.err (!%p767_p0)
}
 0x13d   : > { %s771_s11 = scalar_lea.hbm %s1032_s4, 2048  ;;  %s775_s30 = scalar_lea.hbm %s1084_s3, 4096 }
 0x13e   : > { %p772_p5 = scmp.ne.s32.totalorder %s1032_s4, %s771_s11  ;;  %p776_p4 = scmp.lt.s32.totalorder %s1032_s4, %s1084_s3 }
 0x13f   : > { %p777_p6 = scmp.lt.s32.totalorder %s775_s30, %s771_s11 }
 0x140   : > { %p773_p2 = pnand %p772_p5, %p1100_p11 }
 0x141   : > { %p778_p8 = por %p777_p6, %p776_p4 }
 0x142   : > { %p774_p1 = pneg %p773_p2 }
 0x144   : > { %p779_p3 = pnand %p778_p8, %p774_p1 }
 0x146   : > { %782 = shalt.err (!%p779_p3)
}
 0x147   : > { %s832_s20 = smov 128   ;;  %s833_s28 = smov 8  }
 0x148   : > { %648 = dma.vmem_to_hbm [thread:$0]  (%p1100_p11), %s1034_s17, 2048, %s1032_s4, %s407_s16, %s832_s20, %s832_s20, %s833_s28  }
 0x149 PF: > { %s435_s29 = sand.u32 1, %s813_s12   ;;  %p1101_p7 = scmp.ne.s32.totalorder %s1090_s19, 0 }
 0x14a   : > { %p1102_p9 = scmp.ge.s32.totalorder %s825_s15, 2  ;;  %s436_s22 = scalar_lea.sflag [#allocation4], %s435_s29 }
 0x14c   : > { %p659_p10 = pnand %p1102_p9, %p1101_p7 }
 0x14e   : > { %p660_p12 = pneg %p659_p10 }
 0x150   : > { %808 = dma.done.wait (%p660_p12), %s436_s22, 2048  }
 0x151   : > { %810 = vsyncadd (%p660_p12), %s436_s22, 4294965248  ;;  %p17_p13 = scmp.ge.s32.totalorder %s908_s24, 4   ;;  %s1103_s12 = smov %s817_s13 }
 0x152   : > { %s1104_s13 = smov %s821_s14  ;;  %s1105_s14 = smov %s928_s5 }
 0x153   : > { %s1106_s15 = smov %s908_s24  ;;  %19 = sbr.rel (!%p17_p13) target bundleno = 6 (0x6), region = 81 }
 0x158   :  { %441 = vsyncpa [#allocation3], 1 }
 0x159   :  { %443 = vsyncpa [#allocation3 + $0x1], 1 }
 0x15a   :  { %444 = vsyncpa [#allocation6], 1 }
 0x15b   :  { %445 = vsyncpa [#allocation4], 1 }
 0x15c   :  { %447 = vsyncpa [#allocation4 + $0x1], 1 }

</bundles_post_ra>
